<compile_context>
chip_gen: v6e
topology: v6e:2x2x1
jax: 0.10.0
libtpu: 0.0.40
codegen_flags: <defaults>
</compile_context>

<pallas_src>
import functools
import math

import jax
import jax.numpy as jnp
from jax.experimental import pallas as pl
from jax.experimental.pallas import tpu as pltpu

_MIB = 1024 * 1024


def _cdiv(a, b):
    return -(-a // b)


def _round_up(x, m):
    return _cdiv(x, m) * m


def _sublane_multiple(dtype):
    # Min sublane packing: 8 for 4-byte, 16 for 2-byte, 32 for 1-byte dtypes.
    return max(8, 32 // jnp.dtype(dtype).itemsize)


def _tile_and_pad(dim, preferred, align):
    """Pick an `align`-aligned tile <= preferred and the (minimally) padded
    extent it divides exactly.  Padding is always < align."""
    pad = _round_up(dim, align)
    preferred = max(align, min(preferred, pad))
    t = (preferred // align) * align
    while t > align:
        if pad % t == 0:
            return t, pad
        t -= align
    return align, pad


def _vmem_capacity_bytes():
    try:
        cap = getattr(pltpu.get_tpu_info(), "vmem_capacity_bytes", None)
        if cap:
            return int(cap)
    except Exception:
        pass
    return 64 * _MIB          # conservative default (v7x physical VMEM)


def _nm_keep_mask(z, prune_n, prune_m, compare_dtype=jnp.float32):
    """Keep-mask for n:m magnitude pruning along the last (lane) axis.

    For every contiguous group of `prune_m` elements, keep the `prune_n` with
    largest |z| (ties broken toward the lower index, matching torch.topk).
    Implemented with lane rolls (XLU) so everything stays in the native
    (sublane, lane) layout: one roll + compare per in-group distance s; the
    left-neighbour test reuses the rolled comparison mask.
    """
    absz = jnp.abs(z.astype(compare_dtype))
    k = z.shape[-1]
    lane = jax.lax.broadcasted_iota(jnp.int32, z.shape, dimension=z.ndim - 1)
    off = lane % prune_m                      # position inside the prune group
    rank = jnp.zeros(z.shape, jnp.float32)
    for s in range(1, prune_m):
        # gt[p] = |z[p+s]| > |z[p]|
        right = pltpu.roll(absz, shift=(k - s) % k, axis=z.ndim - 1)
        gt = (right > absz).astype(jnp.float32)
        # right neighbour p+s (same group iff off+s < m): strictly larger -> outranks p
        rank = rank + jnp.where((off + s) < prune_m, gt, 0.0)
        # left neighbour p-s (same group iff off >= s): |z[p-s]| >= |z[p]|
        #   == NOT gt[p-s]  -> roll the mask instead of rolling |z| again.
        gt_left = pltpu.roll(gt, shift=s, axis=z.ndim - 1)
        rank = rank + jnp.where(off >= s, 1.0 - gt_left, 0.0)
    return rank < prune_n


def _linear_act_sp_kernel(x_ref, wt_ref, o_ref, *scratch, prune_n, prune_m,
                          use_prune, use_shift, num_k, tile_k,
                          inv_in_features, full_x, compare_dtype):
    si = 0
    if use_shift:
        eta_ref = scratch[si]; si += 1        # (tile_m, 1) f32 row mean
    if use_prune:
        xsp_ref = scratch[si]; si += 1        # (num_k, tile_m, tile_k) cache
    if num_k > 1:
        acc_ref = scratch[si]; si += 1        # (tile_m, tile_n) f32 accumulator

    j = pl.program_id(1)
    kk = pl.program_id(2)

    def x_slice(k_idx):
        if full_x:
            start = pl.multiple_of(k_idx * tile_k, tile_k)
            return x_ref[:, pl.ds(start, tile_k)]
        return x_ref[...]

    if use_prune:
        if use_shift:
            # Full-row mean, once per M tile (pad K columns are zero, so the
            # sum is exact; divide by the TRUE in_features).
            @pl.when(jnp.logical_and(j == 0, kk == 0))
            def _row_mean():
                xf = x_ref[...].astype(jnp.float32)
                eta_ref[...] = (jnp.sum(xf, axis=-1, keepdims=True)
                                * inv_in_features)

        # Prune one K slice per k step of the first N sweep; all later N tiles
        # reuse the cached x_sp.  Temporaries are bounded to (tile_m, tile_k).
        @pl.when(j == 0)
        def _prune_slice():
            xk = x_slice(kk)
            if use_shift:
                eta = eta_ref[...]
                z = xk.astype(jnp.float32) - eta
                keep = _nm_keep_mask(z, prune_n, prune_m, compare_dtype)
                xsp = (jnp.where(keep, z, 0.0) + eta).astype(xk.dtype)
            else:
                keep = _nm_keep_mask(xk, prune_n, prune_m, compare_dtype)
                xsp = jnp.where(keep, xk, jnp.zeros_like(xk))
            xsp_ref[kk] = xsp

        lhs = xsp_ref[kk]                     # (tile_m, tile_k), input dtype
    else:
        lhs = x_slice(kk)                     # (tile_m, tile_k)

    part = jnp.dot(lhs, wt_ref[...], preferred_element_type=jnp.float32)

    if num_k == 1:
        o_ref[...] = part.astype(o_ref.dtype)
    else:
        @pl.when(kk == 0)
        def _init_acc():
            acc_ref[...] = jnp.zeros_like(acc_ref)

        acc_ref[...] += part

        @pl.when(kk == num_k - 1)
        def _write_out():
            o_ref[...] = acc_ref[...].astype(o_ref.dtype)


def linear_act_sp(x, weight, *, sparsity_type="semi-structured_act_magnitude",
                  transformation_type=None, prune_n=2, prune_m=4,
                  tile_m=None, tile_n=256, tile_k=512, weight_layout="oi",
                  prune_compare_dtype=None):
    """Forward of Linear_act_sp.

    x: (bs, seq, in_features)
    weight: (out_features, in_features) if weight_layout=="oi" (nn.Linear
            layout; transposed once per call here), or (in_features,
            out_features) if weight_layout=="io" (preferred for repeated
            calls: avoids the per-call HBM transpose).
    prune_compare_dtype: dtype for the prune magnitude compares (default f32;
            bf16 is faster on v6e/v7x but may differ on exact ties).
    """
    bs, seq_len, in_features = x.shape
    if weight_layout == "oi":
        assert weight.shape[1] == in_features
        wt = weight.T                         # per-call transpose; prefer "io"
    elif weight_layout == "io":
        assert weight.shape[0] == in_features
        wt = weight
    else:
        raise ValueError(f"unknown weight_layout: {weight_layout}")
    out_features = wt.shape[1]

    if sparsity_type is None:
        use_prune, use_shift = False, False
    elif sparsity_type in ("semi-structured_act_magnitude",
                           "semi-structured_shift"):
        use_prune = True
        use_shift = (transformation_type == "shift"
                     or sparsity_type == "semi-structured_shift")
        if (sparsity_type == "semi-structured_act_magnitude"
                and transformation_type not in (None, "shift")):
            # TODO(synk): 'variance', 'learnable', 'scaling' transformations.
            raise NotImplementedError(
                f"transformation_type={transformation_type} not implemented")
        assert in_features % prune_m == 0, \
            "in_features must be a multiple of prune_m"
    else:
        # TODO(synk): 'unstructured_act_magnitude', 'semi_structural_L_pruner'.
        raise NotImplementedError(
            f"sparsity_type={sparsity_type} not implemented")

    m = bs * seq_len
    mult = _sublane_multiple(x.dtype)
    compare_dtype = (jnp.dtype(prune_compare_dtype) if prune_compare_dtype
                     is not None else jnp.float32)

    vmem_cap = _vmem_capacity_bytes()
    vmem_budget = min(int(0.75 * vmem_cap), 112 * _MIB)

    # ---- N / K tiling (minimal zero-padding if dims are not 128-aligned) ----
    k_align = 128
    if use_prune:
        # keep n:m groups intact across tile & pad boundaries
        k_align = 128 * prune_m // math.gcd(128, prune_m)
    tile_n, n_pad = _tile_and_pad(out_features, tile_n, 128)
    tile_k, k_pad = _tile_and_pad(in_features, tile_k, k_align)
    num_k = k_pad // tile_k
    if use_prune:
        assert tile_k % prune_m == 0

    # ---- M tiling (chip-aware default, dtype-aware sublane rounding) ----
    if tile_m is None:
        # 128-MiB-VMEM parts (v5e/v6e) are weight-DMA bound at tile_m=256, so
        # go to 512 for large M; smaller-VMEM parts (v7x) stay at 256.
        tile_m = 512 if (vmem_cap >= 96 * _MIB and m >= 512) else 256
    tile_m = _round_up(min(tile_m, _round_up(m, mult)), mult)
    # v7x has 2 TensorCores; with pruning the j axis must be "arbitrary"
    # (x_sp cache), so make sure the parallel M axis has >= 2 tiles.
    if use_prune and _round_up(m, tile_m) // tile_m < 2 and m > mult:
        tile_m = _round_up(_cdiv(m, 2), mult)

    xb = jnp.dtype(x.dtype).itemsize
    wb = jnp.dtype(wt.dtype).itemsize

    def estimate(tm, full_x):
        e = (2 * tm * k_pad * xb) if full_x else (2 * tm * tile_k * xb)
        if use_prune:
            e += num_k * tm * tile_k * xb        # x_sp cache
            e += 6 * tm * tile_k * 4             # f32 prune temporaries
            e += tm * 4                          # eta scratch
        e += 2 * tile_k * tile_n * wb            # weight double buffer
        e += 2 * tm * tile_n * xb                # output double buffer
        if num_k > 1:
            e += tm * tile_n * 4                 # f32 accumulator
        return e

    # Dense path: keep the whole K row resident per M tile when it fits so x
    # is fetched once per M tile instead of once per (N-tile, K-tile).
    full_x = use_prune or (2 * tile_m * k_pad * xb <= vmem_budget // 3)
    # Shrink tile_m until the working set fits the chip's VMEM budget.
    while estimate(tile_m, full_x) > vmem_budget and tile_m > mult:
        tile_m = max(mult, _round_up(tile_m // 2, mult))
    est = estimate(tile_m, full_x)
    vmem_limit = int(min(max(1.2 * est, 32 * _MIB), vmem_budget))

    m_pad = _round_up(m, tile_m)

    x_flat = x.reshape(m, in_features)
    if m_pad != m or k_pad != in_features:
        # TODO(synk): the M pad is an extra HBM round-trip of x; a masked-tail
        # grid would avoid it for ragged M.
        x_flat = jnp.pad(x_flat, ((0, m_pad - m), (0, k_pad - in_features)))
    if k_pad != in_features or n_pad != out_features:
        wt = jnp.pad(wt, ((0, k_pad - in_features), (0, n_pad - out_features)))

    grid = (m_pad // tile_m, n_pad // tile_n, num_k)

    if full_x:
        # Full-K row block, block index constant across (j, k): fetched once
        # per M tile (needed for the 'shift' full-row mean; also removes the
        # dense-path per-N-tile x re-fetch).
        x_spec = pl.BlockSpec((tile_m, k_pad), lambda i, j, k: (i, 0))
    else:
        x_spec = pl.BlockSpec((tile_m, tile_k), lambda i, j, k: (i, k))
    w_spec = pl.BlockSpec((tile_k, tile_n), lambda i, j, k: (k, j))
    o_spec = pl.BlockSpec((tile_m, tile_n), lambda i, j, k: (i, j))

    scratch = []
    if use_shift:
        scratch.append(pltpu.VMEM((tile_m, 1), jnp.float32))
    if use_prune:
        scratch.append(pltpu.VMEM((num_k, tile_m, tile_k), x.dtype))
    if num_k > 1:
        scratch.append(pltpu.VMEM((tile_m, tile_n), jnp.float32))

    kernel = functools.partial(
        _linear_act_sp_kernel, prune_n=prune_n, prune_m=prune_m,
        use_prune=use_prune, use_shift=use_shift, num_k=num_k, tile_k=tile_k,
        inv_in_features=1.0 / in_features, full_x=full_x,
        compare_dtype=compare_dtype)

    # M axis parallel (megacore shards M tiles; each TC has its own scratch,
    # so the per-M-tile x_sp cache stays consistent).  j must be "arbitrary"
    # when pruning so the j==0 prune-and-cache assumption holds.
    j_sem = "arbitrary" if use_prune else "parallel"

    cost = pl.CostEstimate(
        flops=2 * m * in_features * out_features,
        transcendentals=0,
        bytes_accessed=(m * in_features * xb
                        + in_features * out_features * wb
                        + m * out_features * xb))

    out_flat = pl.pallas_call(
        kernel,
        out_shape=jax.ShapeDtypeStruct((m_pad, n_pad), x.dtype),
        grid_spec=pltpu.PrefetchScalarGridSpec(
            num_scalar_prefetch=0, grid=grid,
            in_specs=[x_spec, w_spec], out_specs=o_spec,
            scratch_shapes=scratch),
        compiler_params=pltpu.CompilerParams(
            dimension_semantics=("parallel", j_sem, "arbitrary"),
            vmem_limit_bytes=vmem_limit),
        cost_estimate=cost,
    )(x_flat, wt)

    if m_pad != m or n_pad != out_features:
        out_flat = out_flat[:m, :out_features]
    return out_flat.reshape(bs, seq_len, out_features)


# ---------------------------------------------------------------------------
# pure-JAX reference reproducing the PyTorch semantics (for validation only)
# ---------------------------------------------------------------------------
def _reference(x, weight, *, prune_n, prune_m, transformation_type,
               sparsity_type="semi-structured_act_magnitude"):
    bs, seq_len, in_features = x.shape
    xf = x.reshape(-1, in_features)
    if sparsity_type is None:
        return (xf @ weight.T).reshape(bs, seq_len, -1)
    if transformation_type == "shift" or sparsity_type == "semi-structured_shift":
        eta = jnp.mean(xf, axis=1, keepdims=True)
        z = xf - eta
    else:
        eta = None
        z = xf
    z1 = z.reshape(-1, prune_m)
    order = jnp.argsort(-jnp.abs(z1), axis=1, stable=True)   # topk, lower idx wins
    ranks = jnp.argsort(order, axis=1, stable=True)
    mask = (ranks < prune_n).reshape(z.shape)
    zsp = z * mask
    if eta is not None:
        zsp = zsp + eta
    return (zsp @ weight.T).reshape(bs, seq_len, -1)


if __name__ == "__main__":
    key = jax.random.PRNGKey(0)
    kx, kw, kx2, kw2 = jax.random.split(key, 4)

    bs, seq_len, in_features, out_features = 2, 64, 256, 256
    prune_n, prune_m = 2, 4

    x = jax.random.normal(kx, (bs, seq_len, in_features), jnp.float32)
    # deterministic nn.Linear-style init: U(-1/sqrt(in), 1/sqrt(in))
    bound = 1.0 / (in_features ** 0.5)
    weight = jax.random.uniform(kw, (out_features, in_features),
                                jnp.float32, -bound, bound)
    weight_t = jnp.asarray(weight.T)          # pre-transposed once, off the hot path

    # Small tiles so the tests exercise the N sweep (x_sp cache reuse) and the
    # K-accumulator path.
    run = functools.partial(linear_act_sp, prune_n=prune_n, prune_m=prune_m,
                            tile_m=128, tile_n=128, tile_k=128,
                            weight_layout="io")

    # --- semi-structured 2:4 activation pruning, no transformation ---
    out = jax.block_until_ready(
        run(x, weight_t, sparsity_type="semi-structured_act_magnitude",
            transformation_type=None))
    ref = _reference(x, weight, prune_n=prune_n, prune_m=prune_m,
                     transformation_type=None)
    assert out.shape == (bs, seq_len, out_features)
    assert jnp.allclose(out, ref, atol=1e-3, rtol=1e-3), "magnitude path mismatch"

    # --- 'shift' transformation path ---
    out_shift = jax.block_until_ready(
        run(x, weight_t, sparsity_type="semi-structured_act_magnitude",
            transformation_type="shift"))
    ref_shift = _reference(x, weight, prune_n=prune_n, prune_m=prune_m,
                           transformation_type="shift")
    assert jnp.allclose(out_shift, ref_shift, atol=1e-3, rtol=1e-3), \
        "shift path mismatch"

    # --- dense path (sparsity_type=None) ---
    out_dense = jax.block_until_ready(run(x, weight_t, sparsity_type=None))
    ref_dense = _reference(x, weight, prune_n=prune_n, prune_m=prune_m,
                           transformation_type=None, sparsity_type=None)
    assert jnp.allclose(out_dense, ref_dense, atol=1e-3, rtol=1e-3), \
        "dense path mismatch"

    # --- nn.Linear (out, in) weight layout + auto (chip-aware) tiling ---
    out_oi = jax.block_until_ready(
        linear_act_sp(x, weight, sparsity_type="semi-structured_act_magnitude",
                      transformation_type=None, prune_n=prune_n, prune_m=prune_m,
                      weight_layout="oi"))
    assert jnp.allclose(out_oi, ref, atol=1e-3, rtol=1e-3), "oi-layout path mismatch"

    # --- non-128-aligned feature dims (exercises the zero-padding path) ---
    in2, out2, seq2 = 192, 320, 8
    x2 = jax.random.normal(kx2, (bs, seq2, in2), jnp.float32)
    bound2 = 1.0 / (in2 ** 0.5)
    w2 = jax.random.uniform(kw2, (out2, in2), jnp.float32, -bound2, bound2)

    out_pad = jax.block_until_ready(
        linear_act_sp(x2, w2, sparsity_type="semi-structured_act_magnitude",
                      transformation_type="shift", prune_n=prune_n,
                      prune_m=prune_m, weight_layout="oi"))
    ref_pad = _reference(x2, w2, prune_n=prune_n, prune_m=prune_m,
                         transformation_type="shift")
    assert out_pad.shape == (bs, seq2, out2)
    assert jnp.allclose(out_pad, ref_pad, atol=1e-3, rtol=1e-3), \
        "padded shift path mismatch"

    out_pad_d = jax.block_until_ready(
        linear_act_sp(x2, w2, sparsity_type=None, weight_layout="oi"))
    ref_pad_d = _reference(x2, w2, prune_n=prune_n, prune_m=prune_m,
                           transformation_type=None, sparsity_type=None)
    assert jnp.allclose(out_pad_d, ref_pad_d, atol=1e-3, rtol=1e-3), \
        "padded dense path mismatch"

    print("KERNEL_OK")
</pallas_src>

<mosaic_0001>
module attributes {stable_mosaic.version = 11 : i64} {
  func.func @_linear_act_sp_kernel(%arg0: i32, %arg1: i32, %arg2: i32, %arg3: memref<64x256xf32, #tpu.memory_space<vmem>>, %arg4: memref<128x128xf32, #tpu.memory_space<vmem>>, %arg5: memref<64x128xf32, #tpu.memory_space<vmem>>, %arg6: memref<2x64x128xf32, #tpu.memory_space<vmem>>, %arg7: memref<64x128xf32, #tpu.memory_space<vmem>>) attributes {dimension_semantics = [#tpu.dimension_semantics<parallel>, #tpu.dimension_semantics<arbitrary>, #tpu.dimension_semantics<arbitrary>], iteration_bounds = array<i64: 2, 2, 2>, scalar_prefetch = 0 : i64, scratch_operands = 2 : i64, tpu.core_type = #tpu.core_type<tc>, window_params = [{transform_indices = @transform_0, window_bounds = array<i64: 64, 256>}, {transform_indices = @transform_1, window_bounds = array<i64: 128, 128>}, {transform_indices = @transform_2, window_bounds = array<i64: 64, 128>}]} {
    %c0_i32 = arith.constant 0 : i32
    %0 = arith.cmpi eq, %arg1, %c0_i32 : i32
    %1 = arith.extui %0 : i1 to i32
    %c0_i32_0 = arith.constant 0 : i32
    %2 = arith.cmpi ne, %1, %c0_i32_0 : i32
    scf.if %2 {
      %c128_i32 = arith.constant 128 : i32
      %17 = arith.muli %arg2, %c128_i32 : i32
      %18 = tpu.assume_multiple %17, 128 : i32
      %c0_11 = arith.constant 0 : index
      %19 = arith.index_cast %18 : i32 to index
      %20 = vector.load %arg3[%c0_11, %19] : memref<64x256xf32, #tpu.memory_space<vmem>>, vector<64x128xf32>
      %21 = math.absf %20 : vector<64x128xf32>
      %22 = tpu.iota {dimensions = array<i32: 1>} : vector<64x128xi32>
      %c4_i32 = arith.constant 4 : i32
      %c0_i32_12 = arith.constant 0 : i32
      %23 = arith.cmpi eq, %c4_i32, %c0_i32_12 : i32
      %c1_i32_13 = arith.constant 1 : i32
      %24 = arith.select %23, %c1_i32_13, %c4_i32 : i32
      %25 = vector.broadcast %24 : i32 to vector<64x128xi32>
      %26 = arith.remsi %22, %25 : vector<64x128xi32>
      %c0_i32_14 = arith.constant 0 : i32
      %27 = vector.broadcast %c0_i32_14 : i32 to vector<64x128xi32>
      %28 = arith.cmpi ne, %26, %27 : vector<64x128xi32>
      %c0_i32_15 = arith.constant 0 : i32
      %29 = vector.broadcast %c0_i32_15 : i32 to vector<64x128xi32>
      %30 = arith.cmpi slt, %26, %29 : vector<64x128xi32>
      %c0_i32_16 = arith.constant 0 : i32
      %31 = arith.cmpi slt, %24, %c0_i32_16 : i32
      %32 = vector.broadcast %31 : i1 to vector<64x128xi1>
      %33 = vector.broadcast %32 : vector<64x128xi1> to vector<64x128xi1>
      %34 = arith.xori %30, %33 : vector<64x128xi1>
      %35 = arith.andi %34, %28 : vector<64x128xi1>
      %36 = vector.broadcast %24 : i32 to vector<64x128xi32>
      %37 = arith.addi %26, %36 : vector<64x128xi32>
      %38 = arith.select %35, %37, %26 : vector<64x128xi1>, vector<64x128xi32>
      %cst_17 = arith.constant 0.000000e+00 : f32
      %39 = vector.broadcast %cst_17 : f32 to vector<64x128xf32>
      %c127_i32 = arith.constant 127 : i32
      %40 = tpu.dynamic_rotate %21 by %c127_i32 dim 1 : vector<64x128xf32>, i32 -> vector<64x128xf32>
      %41 = arith.cmpf ogt, %40, %21 : vector<64x128xf32>
      %42 = arith.extui %41 : vector<64x128xi1> to vector<64x128xi32>
      %43 = arith.sitofp %42 : vector<64x128xi32> to vector<64x128xf32>
      %c1_i32_18 = arith.constant 1 : i32
      %44 = vector.broadcast %c1_i32_18 : i32 to vector<64x128xi32>
      %45 = arith.addi %38, %44 : vector<64x128xi32>
      %c4_i32_19 = arith.constant 4 : i32
      %46 = vector.broadcast %c4_i32_19 : i32 to vector<64x128xi32>
      %47 = arith.cmpi slt, %45, %46 : vector<64x128xi32>
      %cst_20 = arith.constant 0.000000e+00 : f32
      %48 = vector.broadcast %cst_20 : f32 to vector<64x128xf32>
      %49 = arith.select %47, %43, %48 : vector<64x128xi1>, vector<64x128xf32>
      %50 = arith.addf %39, %49 : vector<64x128xf32>
      %c1_i32_21 = arith.constant 1 : i32
      %51 = tpu.dynamic_rotate %43 by %c1_i32_21 dim 1 : vector<64x128xf32>, i32 -> vector<64x128xf32>
      %c1_i32_22 = arith.constant 1 : i32
      %52 = vector.broadcast %c1_i32_22 : i32 to vector<64x128xi32>
      %53 = arith.cmpi sge, %38, %52 : vector<64x128xi32>
      %cst_23 = arith.constant 1.000000e+00 : f32
      %54 = vector.broadcast %cst_23 : f32 to vector<64x128xf32>
      %55 = arith.subf %54, %51 : vector<64x128xf32>
      %cst_24 = arith.constant 0.000000e+00 : f32
      %56 = vector.broadcast %cst_24 : f32 to vector<64x128xf32>
      %57 = arith.select %53, %55, %56 : vector<64x128xi1>, vector<64x128xf32>
      %58 = arith.addf %50, %57 : vector<64x128xf32>
      %c126_i32 = arith.constant 126 : i32
      %59 = tpu.dynamic_rotate %21 by %c126_i32 dim 1 : vector<64x128xf32>, i32 -> vector<64x128xf32>
      %60 = arith.cmpf ogt, %59, %21 : vector<64x128xf32>
      %61 = arith.extui %60 : vector<64x128xi1> to vector<64x128xi32>
      %62 = arith.sitofp %61 : vector<64x128xi32> to vector<64x128xf32>
      %c2_i32 = arith.constant 2 : i32
      %63 = vector.broadcast %c2_i32 : i32 to vector<64x128xi32>
      %64 = arith.addi %38, %63 : vector<64x128xi32>
      %c4_i32_25 = arith.constant 4 : i32
      %65 = vector.broadcast %c4_i32_25 : i32 to vector<64x128xi32>
      %66 = arith.cmpi slt, %64, %65 : vector<64x128xi32>
      %cst_26 = arith.constant 0.000000e+00 : f32
      %67 = vector.broadcast %cst_26 : f32 to vector<64x128xf32>
      %68 = arith.select %66, %62, %67 : vector<64x128xi1>, vector<64x128xf32>
      %69 = arith.addf %58, %68 : vector<64x128xf32>
      %c2_i32_27 = arith.constant 2 : i32
      %70 = tpu.dynamic_rotate %62 by %c2_i32_27 dim 1 : vector<64x128xf32>, i32 -> vector<64x128xf32>
      %c2_i32_28 = arith.constant 2 : i32
      %71 = vector.broadcast %c2_i32_28 : i32 to vector<64x128xi32>
      %72 = arith.cmpi sge, %38, %71 : vector<64x128xi32>
      %cst_29 = arith.constant 1.000000e+00 : f32
      %73 = vector.broadcast %cst_29 : f32 to vector<64x128xf32>
      %74 = arith.subf %73, %70 : vector<64x128xf32>
      %cst_30 = arith.constant 0.000000e+00 : f32
      %75 = vector.broadcast %cst_30 : f32 to vector<64x128xf32>
      %76 = arith.select %72, %74, %75 : vector<64x128xi1>, vector<64x128xf32>
      %77 = arith.addf %69, %76 : vector<64x128xf32>
      %c125_i32 = arith.constant 125 : i32
      %78 = tpu.dynamic_rotate %21 by %c125_i32 dim 1 : vector<64x128xf32>, i32 -> vector<64x128xf32>
      %79 = arith.cmpf ogt, %78, %21 : vector<64x128xf32>
      %80 = arith.extui %79 : vector<64x128xi1> to vector<64x128xi32>
      %81 = arith.sitofp %80 : vector<64x128xi32> to vector<64x128xf32>
      %c3_i32 = arith.constant 3 : i32
      %82 = vector.broadcast %c3_i32 : i32 to vector<64x128xi32>
      %83 = arith.addi %38, %82 : vector<64x128xi32>
      %c4_i32_31 = arith.constant 4 : i32
      %84 = vector.broadcast %c4_i32_31 : i32 to vector<64x128xi32>
      %85 = arith.cmpi slt, %83, %84 : vector<64x128xi32>
      %cst_32 = arith.constant 0.000000e+00 : f32
      %86 = vector.broadcast %cst_32 : f32 to vector<64x128xf32>
      %87 = arith.select %85, %81, %86 : vector<64x128xi1>, vector<64x128xf32>
      %88 = arith.addf %77, %87 : vector<64x128xf32>
      %c3_i32_33 = arith.constant 3 : i32
      %89 = tpu.dynamic_rotate %81 by %c3_i32_33 dim 1 : vector<64x128xf32>, i32 -> vector<64x128xf32>
      %c3_i32_34 = arith.constant 3 : i32
      %90 = vector.broadcast %c3_i32_34 : i32 to vector<64x128xi32>
      %91 = arith.cmpi sge, %38, %90 : vector<64x128xi32>
      %cst_35 = arith.constant 1.000000e+00 : f32
      %92 = vector.broadcast %cst_35 : f32 to vector<64x128xf32>
      %93 = arith.subf %92, %89 : vector<64x128xf32>
      %cst_36 = arith.constant 0.000000e+00 : f32
      %94 = vector.broadcast %cst_36 : f32 to vector<64x128xf32>
      %95 = arith.select %91, %93, %94 : vector<64x128xi1>, vector<64x128xf32>
      %96 = arith.addf %88, %95 : vector<64x128xf32>
      %cst_37 = arith.constant 2.000000e+00 : f32
      %97 = vector.broadcast %cst_37 : f32 to vector<64x128xf32>
      %98 = arith.cmpf olt, %96, %97 : vector<64x128xf32>
      %cst_38 = arith.constant 0.000000e+00 : f32
      %99 = vector.broadcast %cst_38 : f32 to vector<64x128xf32>
      %100 = arith.select %98, %20, %99 : vector<64x128xi1>, vector<64x128xf32>
      %101 = arith.index_cast %arg2 : i32 to index
      %c0_39 = arith.constant 0 : index
      %c0_40 = arith.constant 0 : index
      %102 = vector.load %arg6[%101, %c0_39, %c0_40] : memref<2x64x128xf32, #tpu.memory_space<vmem>>, vector<1x64x128xf32>
      %103 = vector.shape_cast %102 : vector<1x64x128xf32> to vector<64x128xf32>
      %104 = vector.shape_cast %100 : vector<64x128xf32> to vector<1x64x128xf32>
      tpu.vector_store %arg6[%101, %c0_39, %c0_40], %104 {strides = array<i32>} : memref<2x64x128xf32, #tpu.memory_space<vmem>>, vector<1x64x128xf32>,
    } else {
    }
    %3 = arith.index_cast %arg2 : i32 to index
    %c0 = arith.constant 0 : index
    %c0_1 = arith.constant 0 : index
    %4 = vector.load %arg6[%3, %c0, %c0_1] : memref<2x64x128xf32, #tpu.memory_space<vmem>>, vector<1x64x128xf32>
    %5 = vector.shape_cast %4 : vector<1x64x128xf32> to vector<64x128xf32>
    %c0_2 = arith.constant 0 : index
    %c0_3 = arith.constant 0 : index
    %6 = vector.load %arg4[%c0_2, %c0_3] : memref<128x128xf32, #tpu.memory_space<vmem>>, vector<128x128xf32>
    %cst = arith.constant dense<0.000000e+00> : vector<64x128xf32>
    %7 = tpu.matmul %5, %6, %cst {dimension_numbers = #tpu.dot_dimension_numbers<[1], [0], [0], [1], [0, 0, 1, 1], [], []>} : vector<64x128xf32>, vector<128x128xf32>, vector<64x128xf32> -> vector<64x128xf32>
    %c0_i32_4 = arith.constant 0 : i32
    %8 = arith.cmpi eq, %arg2, %c0_i32_4 : i32
    %9 = arith.extui %8 : i1 to i32
    %c0_i32_5 = arith.constant 0 : i32
    %10 = arith.cmpi ne, %9, %c0_i32_5 : i32
    scf.if %10 {
      %cst_11 = arith.constant 0.000000e+00 : f32
      %17 = vector.broadcast %cst_11 : f32 to vector<64x128xf32>
      %c0_12 = arith.constant 0 : index
      %c0_13 = arith.constant 0 : index
      %18 = vector.load %arg7[%c0_12, %c0_13] : memref<64x128xf32, #tpu.memory_space<vmem>>, vector<64x128xf32>
      tpu.vector_store %arg7[%c0_12, %c0_13], %17 {strides = array<i32>} : memref<64x128xf32, #tpu.memory_space<vmem>>, vector<64x128xf32>,
    } else {
    }
    %c0_6 = arith.constant 0 : index
    %c0_7 = arith.constant 0 : index
    %11 = vector.load %arg7[%c0_6, %c0_7] : memref<64x128xf32, #tpu.memory_space<vmem>>, vector<64x128xf32>
    %12 = arith.addf %11, %7 : vector<64x128xf32>
    %c0_8 = arith.constant 0 : index
    %c0_9 = arith.constant 0 : index
    %13 = vector.load %arg7[%c0_8, %c0_9] : memref<64x128xf32, #tpu.memory_space<vmem>>, vector<64x128xf32>
    tpu.vector_store %arg7[%c0_8, %c0_9], %12 {strides = array<i32>} : memref<64x128xf32, #tpu.memory_space<vmem>>, vector<64x128xf32>,
    %c1_i32 = arith.constant 1 : i32
    %14 = arith.cmpi eq, %arg2, %c1_i32 : i32
    %15 = arith.extui %14 : i1 to i32
    %c0_i32_10 = arith.constant 0 : i32
    %16 = arith.cmpi ne, %15, %c0_i32_10 : i32
    scf.if %16 {
      %c0_11 = arith.constant 0 : index
      %c0_12 = arith.constant 0 : index
      %17 = vector.load %arg7[%c0_11, %c0_12] : memref<64x128xf32, #tpu.memory_space<vmem>>, vector<64x128xf32>
      %c0_13 = arith.constant 0 : index
      %c0_14 = arith.constant 0 : index
      %18 = vector.load %arg5[%c0_13, %c0_14] : memref<64x128xf32, #tpu.memory_space<vmem>>, vector<64x128xf32>
      tpu.vector_store %arg5[%c0_13, %c0_14], %17 {strides = array<i32>} : memref<64x128xf32, #tpu.memory_space<vmem>>, vector<64x128xf32>,
    } else {
    }
    return
  }
  func.func @transform_0(%arg0: i32, %arg1: i32, %arg2: i32) -> (i32, i32) {
    %c0_i32 = arith.constant 0 : i32
    %c0_i32_0 = arith.constant 0 : i32
    return %arg0, %c0_i32 : i32, i32
  }
  func.func @transform_1(%arg0: i32, %arg1: i32, %arg2: i32) -> (i32, i32) {
    %c0_i32 = arith.constant 0 : i32
    return %arg2, %arg1 : i32, i32
  }
  func.func @transform_2(%arg0: i32, %arg1: i32, %arg2: i32) -> (i32, i32) {
    %c0_i32 = arith.constant 0 : i32
    return %arg0, %arg1 : i32, i32
  }
}

</mosaic_0001>

<bundles_post_ra>
// kernel: tpu_custom_call.1
= control target key start
LH: loop header
LB: loop body
LE: loop exit
PB: predicated region body
PF: predicated region fallthrough
CT: control target
= control target key end

     0   :  { %s2229_s0 = inlined_call_operand.hbm [shape: f32[128,256], index: 0, kind: input, shape index: {}]   ;;  %s2230_s1 = inlined_call_operand.hbm [shape: f32[256,256], index: 1, kind: input, shape index: {}]   ;;  %s2231_s2 = inlined_call_operand.hbm [shape: f32[128,256], index: 2, kind: output, shape index: {}]  }
   0x1   :  { %2246 = sst [smem:[#allocation23_spill]] %s2229_s0 }
   0x2   :  { %2247 = sst [smem:[#allocation24_spill]] %s2231_s2 }
   0x3   :  { %7 = vsyncpa [#allocation5], 0 }
   0x4   :  { %9 = vsyncpa [#allocation5 + $0x1], 0 }
   0x5   :  { %10 = vsyncpa [#allocation8], 0 }
   0x6   :  { %12 = vsyncpa [#allocation8 + $0x1], 0 }
   0x7   :  { %13 = vsyncpa [#allocation6], 0 }
   0x8   :  { %15 = vsyncpa [#allocation6 + $0x1], 0  ;;  %s1553_s9 = smov 0   ;;  %s1555_s10 = smov 0  }
   0x9   :  { %s1557_s11 = smov 0   ;;  %s1559_s12 = smov 0  }
   0xa   :  { %s1561_s13 = smov 0   ;;  %s1563_s14 = smov 0  }
   0xb   :  { %s1565_s15 = smov 0   ;;  %s1567_s16 = smov 0  }
   0xc   :  { %s1569_s17 = smov 0   ;;  %s1571_s18 = smov 0  }
   0xd   :  { %s1573_s19 = smov 0   ;;  %s1575_s20 = smov 0  }
   0xe   :  { %s1577_s21 = smov 0   ;;  %s1579_s22 = smov 0  }
   0xf   :  { %s1581_s23 = smov 0   ;;  %s1583_s24 = smov 0  }
  0x10 LB: > { %2248 = sst [smem:[#allocation13_spill]] %s1458_s9  ;;  %s919_s25 = sadd.s32 4294967295, %s1518_s24   ;;  %s1518_s24 = sphi %s1583_s24, %s21_s24   ;;  %s1514_s23 = sphi %s1581_s23, %s2303_s23   ;;  %s1510_s22 = sphi %s1579_s22, %s2302_s22   ;;  %s1506_s21 = sphi %s1577_s21, %s2301_s21   ;;  %s1502_s20 = sphi %s1575_s20, %s2300_s20   ;;  %s1498_s19 = sphi %s1573_s19, %s2299_s19   ;;  %s1494_s18 = sphi %s1571_s18, %s2298_s18   ;;  %s1490_s17 = sphi %s1569_s17, %s2297_s17   ;;  %s1486_s16 = sphi %s1567_s16, %s2296_s16   ;;  %s1482_s15 = sphi %s1565_s15, %s2295_s15   ;;  %s1478_s14 = sphi %s1563_s14, %s2294_s14   ;;  %s1474_s13 = sphi %s1561_s13, %s2293_s13   ;;  %s1470_s12 = sphi %s1559_s12, %s2292_s12   ;;  %s1466_s11 = sphi %s1557_s11, %s2291_s11   ;;  %s1462_s10 = sphi %s1555_s10, %s2290_s10   ;;  %s1458_s9 = sphi %s1553_s9, %s2286_s9  }
  0x11   : > { %2249 = sst [smem:[#allocation14_spill]] %s1462_s10  ;;  %s920_s26 = sadd.s32 4294967294, %s1518_s24  }
  0x12   : > { %2250 = sst [smem:[#allocation15_spill]] %s1494_s18  ;;  %p54_p0 = scmp.ne.s32.totalorder %s1490_s17, %s1486_s16 }
  0x13   : > { %2251 = sst [smem:[#allocation16_spill]] %s1498_s19  ;;  %p2237_p1 = scmp.eq.s32.totalorder %s1518_s24, 0 }
  0x14   : > { %2252 = sst [smem:[#allocation17_spill]] %s1502_s20  ;;  %p60_p2 = scmp.ne.s32.totalorder %s1486_s16, %s1482_s15 }
  0x15   : > { %p1639_p3 = scmp.eq.s32.totalorder %s919_s25, 0  ;;  %p1645_p4 = por %p2237_p1, %p54_p0 }
  0x16   : > { %p113_p5 = scmp.ne.s32.totalorder %s1466_s11, %s1462_s10  ;;  %p114_p7 = scmp.eq.s32.totalorder %s919_s25, 7 }
  0x17   : > { %p1653_p6 = por %p1639_p3, %p60_p2  ;;  %p119_p8 = scmp.ne.s32.totalorder %s1462_s10, %s1458_s9 }
  0x18   : > { %p120_p9 = scmp.eq.s32.totalorder %s920_s26, 7  ;;  %p1659_p10 = por %p114_p7, %p113_p5 }
  0x19   : > { %p1093_p12 = scmp.lt.s32.totalorder %s1518_s24, 8  ;;  %s140_s6 = sand.u32 1, %s1490_s17  }
  0x1a   : > { %s2256_s4 = scalar_select %p1659_p10, 1, 0 }
  0x1b   : > { %p1663_p11 = por %p120_p9, %p119_p8  ;;  %s973_s7 = sshll.u32 %s1514_s23, 11 }
  0x1c   : > { %2257 = sst [smem:[#allocation18_spill]] %s2256_s4  ;;  %s923_s8 = sshll.u32 %s140_s6, 7 }
  0x1d   : > { %s2258_s5 = scalar_select %p1663_p11, 1, 0 }
  0x1e   : > { %s2260_s0 = sld [smem:[#allocation23_spill]]  ;;  %s144_s2 = scalar_lea.vmem [#allocation4], %s923_s8 }
  0x1f   : > { %2259 = sst [smem:[#allocation19_spill]] %s2258_s5  ;;  %s152_s25 = sshll.u32 %s144_s2, 4  ;;  %s153_s25 = int_to_ptr.vmem [resolvable:$true] %s152_s25 }
  0x20   : > { %p1677_p13 = pnand %p1093_p12, %p1645_p4  ;;  %s141_s9 = scalar_lea.sflag [#allocation5], %s140_s6 }
  0x21   : > { %s1311_s5 = scalar_lea.vmem %s153_s25, 2048  ;;  %s1520_s4 = smov [#allocation4]  }
  0x22   : > { %p1300_p0 = pneg %p1677_p13  ;;  %p1312_p2 = scmp.ne.s32.totalorder %s153_s25, %s1311_s5 }
  0x23   : > { %s1316_s28 = sshll.u32 %s1520_s4, 4  ;;  %s1317_s28 = int_to_ptr.vmem [resolvable:$false] %s1316_s28 }
  0x24   : > { %s151_s27 = scalar_lea.hbm %s2260_s0, %s973_s7  ;;  %p1314_p5 = pnand %p1312_p2, %p1300_p0 }
  0x25   : > { %s1318_s7 = scalar_lea.vmem %s1317_s28, 4096  ;;  %p1319_p8 = scmp.lt.s32.totalorder %s153_s25, %s1317_s28 }
  0x26   : > { %p1315_p7 = pneg %p1314_p5  ;;  %p1320_p9 = scmp.lt.s32.totalorder %s1318_s7, %s1311_s5 }
  0x28   : > { %p1321_p1 = por %p1320_p9, %p1319_p8 }
  0x2a   : > { %p1322_p4 = pnand %p1321_p1, %p1315_p7 }
  0x2c   : > { %1325 = shalt.err (!%p1322_p4)
}
  0x2d   : > { %s2238_s2 = smov 256   ;;  %s1522_s30 = smov 16  }
  0x2e   : > { %1085 = dma.hbm_to_vmem [thread:$0]  (!%p1677_p13), %s151_s27, 2048, %s153_s25, %s141_s9, %s2238_s2, %s2238_s2, %s1522_s30  }
  0x2f   : > { %p931_p1 = scmp.ge.s32.totalorder %s1518_s24, 1  ;;  %p183_p0 = scmp.lt.s32.totalorder %s1518_s24, 9 }
  0x30   : > { %s33_s5 = sadd.s32 1, %s1506_s21  ;;  %s36_s6 = sadd.s32 1, %s1510_s22 }
  0x31   : > { %p1689_p2 = pnand %p931_p1, %p183_p0  ;;  %p34_p5 = scmp.ge.s32.totalorder %s33_s5, 2 }
  0x32   : > { %s75_s8 = sadd.s32 1, %s1478_s14  ;;  %p82_p7 = scmp.ne.s32.totalorder %s1478_s14, %s1474_s13 }
  0x33   : > { %s2305_s5 = smov (%p34_p5, %s33_s5), 0  ;;  %s2307_s6 = smov (!%p34_p5, %s36_s6), %s1510_s22 }
  0x34   : > { %2263 = sst [smem:[#allocation20_spill]] %s2305_s5  ;;  %s70_s9 = ssub.s32 %s1506_s21, %s2305_s5 }
  0x35   : > { %p2264_p13 = scmp.eq.s32.totalorder %s1518_s24, 0  ;;  %p38_p9 = scmp.ge.s32.totalorder %s2307_s6, 2 }
  0x36   : > { %p88_p4 = scmp.ne.s32.totalorder %s1474_s13, %s1470_s12  ;;  %s103_s15 = sadd.s32 1, %s1466_s11 }
  0x37   : > { %p1705_p8 = por %p82_p7, %p2264_p13  ;;  %s162_s25 = sand.u32 1, %s1478_s14  }
  0x38   : > { %s2309_s6 = smov (%p38_p9, %s2307_s6), 0  ;;  %s2267_s26 = sadd.s32 1, %s1514_s23 }
  0x39   : > { %2266 = sst [smem:[#allocation21_spill]] %s2309_s6  ;;  %s2311_s26 = smov (!%p38_p9, %s2267_s26), %s1514_s23 }
  0x3a   : > { %s71_s28 = ssub.s32 %s1510_s22, %s2309_s6  ;;  %p1722_p1 = por %p88_p4, %p1639_p3 }
  0x3b   : > { %p42_p0 = scmp.ge.s32.totalorder %s2311_s26, 2  ;;  %s72_s12 = sor.u32 %s71_s28, %s70_s9 }
  0x3c   : > { %p73_p5 = scmp.eq.s32.totalorder %s72_s12, 0  ;;  %s927_s0 = sshll.u32 %s162_s25, 7 }
  0x3d   : > { %s2313_s26 = smov (%p42_p0, %s2311_s26), 0  ;;  %s2270_s29 = sadd.s32 1, %s1490_s17 }
  0x3e   : > { %2269 = sst [smem:[#allocation22_spill]] %s2313_s26  ;;  %s44_s2 = ssub.s32 %s1514_s23, %s2313_s26 }
  0x3f   : > { %s1729_s30 = scalar_select %p73_p5, %s1478_s14, %s75_s8  }
  0x40   : > { %p45_p7 = scmp.eq.s32.totalorder %s44_s2, 0  ;;  %s100_s6 = sor.u32 %s71_s28, %s44_s2 }
  0x41   : > { %p101_p13 = scmp.eq.s32.totalorder %s100_s6, 0  ;;  %s974_s18 = sshll.u32 %s1506_s21, 5 }
  0x42   : > { %s1736_s5 = scalar_select %p45_p7, %s1490_s17, %s2270_s29  }
  0x43   : > { %s1739_s20 = scalar_select %p101_p13, %s1466_s11, %s103_s15  }
  0x44   : > { %s166_s9 = scalar_lea.vmem [#allocation7], %s927_s0  ;;  %s172_s19 = sadd.s32 %s1510_s22, %s974_s18 }
  0x45   : > { %s175_s12 = sshll.u32 %s166_s9, 4  ;;  %s930_s10 = sshll.u32 %s172_s19, 7  ;;  %s176_s12 = int_to_ptr.vmem [resolvable:$true] %s175_s12 }
  0x46   : > { %p1747_p3 = pnand %p1093_p12, %p1705_p8  ;;  %s174_s6 = scalar_lea.hbm %s2230_s1, %s930_s10 }
  0x47   : > { %s163_s28 = scalar_lea.sflag [#allocation8], %s162_s25  ;;  %s1339_s15 = scalar_lea.vmem %s176_s12, 2048 }
  0x48   : > { %p1328_p9 = pneg %p1747_p3  ;;  %p1340_p4 = scmp.ne.s32.totalorder %s176_s12, %s1339_s15 }
  0x49   : > { %s1523_s0 = smov [#allocation7]  }
  0x4a   : > { %p1342_p0 = pnand %p1340_p4, %p1328_p9  ;;  %s1344_s18 = sshll.u32 %s1523_s0, 4  ;;  %s1345_s18 = int_to_ptr.vmem [resolvable:$false] %s1344_s18 }
  0x4b   : > { %s1346_s19 = scalar_lea.vmem %s1345_s18, 4096  ;;  %p1347_p12 = scmp.lt.s32.totalorder %s176_s12, %s1345_s18 }
  0x4c   : > { %p1343_p5 = pneg %p1342_p0  ;;  %p1348_p8 = scmp.lt.s32.totalorder %s1346_s19, %s1339_s15 }
  0x4e   : > { %p1349_p7 = por %p1348_p8, %p1347_p12 }
  0x50   : > { %p1350_p13 = pnand %p1349_p7, %p1343_p5 }
  0x52   : > { %1353 = shalt.err (!%p1350_p13)
}
  0x53   : > { %s1524_s27 = smov 128   ;;  %s1525_s26 = smov 8  }
  0x54   : > { %s2272_s10 = smov 256   ;;  %187 = sbr.rel (%p1689_p2) target bundleno = 688 (0x2b0), region = 28 }
  0x55   : > { %1088 = dma.hbm_to_vmem [thread:$0]  (!%p1747_p3), %s174_s6, 2048, %s176_s12, %s163_s28, %s2272_s10, %s1524_s27, %s1525_s26  }
  0x56   : > { %s189_s25 = sand.u32 (!%p1689_p2), 1, %s1486_s16  }
  0x57   : > { %s932_s29 = sshll.u32 (!%p1689_p2), %s189_s25, 7  ;;  %s190_s9 = scalar_lea.sflag (!%p1689_p2), [#allocation5], %s189_s25 }
  0x58   : > { %s193_s2 = scalar_lea.vmem (!%p1689_p2), [#allocation4], %s932_s29 }
  0x59   : > { %1445 = dma.done.wait (%p1653_p6), %s190_s9, 2048  }
  0x5a   : > { %1447 = vsyncadd (%p1653_p6), %s190_s9, 4294965248  ;;  %s198_s15 = sand.u32 1, %s1474_s13  }
  0x5b   : > { %s933_s8 = sshll.u32 %s198_s15, 7  ;;  %s199_s0 = scalar_lea.sflag [#allocation8], %s198_s15 }
  0x5c   : > { %s1767_s12 = scalar_lea.vmem [#allocation7], %s933_s8 }
  0x5d   : > { %1449 = dma.done.wait (%p1722_p1), %s199_s0, 2048  }
  0x5e   : > { %1451 = vsyncadd (%p1722_p1), %s199_s0, 4294965248  ;;  %s2273_s4 = sld [smem:[#allocation14_spill]] }
  0x5f   : > { %s2274_s3 = sld [smem:[#allocation16_spill]] }
  0x64   : > { %s225_s6 = sand.u32 1, %s2273_s4  }
  0x65   : > { %s934_s28 = sshll.u32 %s225_s6, 6  ;;  %p935_p6 = scmp.ne.s32.totalorder %s2274_s3, 0 }
  0x66   : > { %s1776_s18 = scalar_lea.vmem [#allocation9], %s934_s28  ;;  %s2275_s19 = sld [smem:[#allocation15_spill]] (!%p935_p6) }
  0x67   : > { %234 = sbr.rel (%p935_p6) target bundleno = 404 (0x194), region = 40  ;;  %s1526_s7 = smov (!%p935_p6), 127  }
  0x68   : > { %s1527_s29 = smov (!%p935_p6), 126   ;;  %s1528_s9 = smov (!%p935_p6), 125  }
  0x69   : > { %s1531_s15 = smov (!%p935_p6), 2   ;;  %s1532_s8 = smov (!%p935_p6), 3  }
  0x6c   : > { %s936_s27 = sshll.u32 %s2275_s19, 7  ;;  %v1529_v20 = vmov 0.0   ;;  %s962_s0 = sshll.u32 %s2275_s19, 6 }
  0x6d   : > { %s236_s26 = sshra.s32 %s936_s27, 7  ;;  %s2085_s4 = scalar_lea.vmem [#allocation2], %s962_s0 }
  0x6e   : > { %s937_s10 = sshll.u32 %s236_s26, 3 }
  0x6f   : > { %s239_s25 = scalar_lea.vmem %s193_s2, %s937_s10 [#allocation4]  ;;  %s1530_s2 = smov 1  }
  0x70   : > { %v1780_v0 = vld [vmem:[%s239_s25 + $0x20] sm:$0xff]  ;;  %v1784_v2 = vld [vmem:[%s239_s25 + $0x30] sm:$0xff] }
  0x71   : > { %v1782_v1 = vld [vmem:[%s239_s25] sm:$0xff]  ;;  %v1787_v3 = vand.u32 2147483647, %v1780_v0  ;;  %v1792_v5 = vld [vmem:[%s239_s25 + $0x10] sm:$0xff]  ;;  %v1797_v6 = vand.u32 2147483647, %v1784_v2 }
  0x72   : > { %v1790_v4 = vand.u32 2147483647, %v1782_v1  ;;  %v1800_v7 = vand.u32 2147483647, %v1792_v5  ;;  %v1802_v8 = vld [vmem:[%s239_s25 + $0x50] sm:$0xff]  ;;  %v1804_v9 = vld [vmem:[%s239_s25 + $0x40] sm:$0xff] }
  0x73   : > { %274 = vrot.lane.b32.xlu1 %v1787_v3, %s1526_s7  ;;  %v1809_v10 = vand.u32 2147483647, %v1802_v8  ;;  %v1812_v11 = vand.u32 2147483647, %v1804_v9  ;;  %v1814_v12 = vld [vmem:[%s239_s25 + $0x70] sm:$0xff]  ;;  %v1816_v13 = vld [vmem:[%s239_s25 + $0x60] sm:$0xff] }
  0x74   : > { %270 = vrot.lane.b32.xlu0 %v1790_v4, %s1526_s7  ;;  %v1821_v14 = vand.u32 2147483647, %v1814_v12  ;;  %v1824_v15 = vand.u32 2147483647, %v1816_v13 }
  0x77   : > { %276 = vrot.lane.b32.xlu1 %v1797_v6, %s1526_s7 }
  0x78   : > { %272 = vrot.lane.b32.xlu0 %v1800_v7, %s1526_s7 }
  0x7b   : > { %280 = vrot.lane.b32.xlu1 %v1809_v10, %s1526_s7 }
  0x7c   : > { %278 = vrot.lane.b32.xlu0 %v1812_v11, %s1526_s7 }
  0x7f   : > { %284 = vrot.lane.b32.xlu1 %v1821_v14, %s1526_s7 }
  0x80   : > { %282 = vrot.lane.b32.xlu0 %v1824_v15, %s1526_s7 }
  0x83   : > { %371 = vrot.lane.b32.xlu1 %v1800_v7, %s1527_s29 }
  0x84   : > { %369 = vrot.lane.b32.xlu0 %v1790_v4, %s1527_s29 }
  0x87   : > { %375 = vrot.lane.b32.xlu1 %v1797_v6, %s1527_s29 }
  0x88   : > { %373 = vrot.lane.b32.xlu0 %v1787_v3, %s1527_s29 }
  0x8b   : > { %379 = vrot.lane.b32.xlu1 %v1809_v10, %s1527_s29 }
  0x8c   : > { %377 = vrot.lane.b32.xlu0 %v1812_v11, %s1527_s29 }
  0x8f   : > { %383 = vrot.lane.b32.xlu1 %v1821_v14, %s1527_s29 }
  0x90   : > { %381 = vrot.lane.b32.xlu0 %v1824_v15, %s1527_s29 }
  0x93   : > { %470 = vrot.lane.b32.xlu1 %v1800_v7, %s1528_s9 }
  0x94   : > { %468 = vrot.lane.b32.xlu0 %v1790_v4, %s1528_s9 }
  0x97   : > { %474 = vrot.lane.b32.xlu1 %v1797_v6, %s1528_s9 }
  0x98   : > { %472 = vrot.lane.b32.xlu0 %v1787_v3, %s1528_s9 }
  0x9b   : > { %478 = vrot.lane.b32.xlu1 %v1809_v10, %s1528_s9 }
  0x9c   : > { %476 = vrot.lane.b32.xlu0 %v1812_v11, %s1528_s9 }
  0x9f   : > { %482 = vrot.lane.b32.xlu1 %v1821_v14, %s1528_s9 }
  0xa0   : > { %480 = vrot.lane.b32.xlu0 %v1824_v15, %s1528_s9 }
  0xe5   : > { %v275_v16 = vpop.permute.xlu1 %274 }
  0xe6   : > { %v271_v17 = vpop.permute.xlu0 %270  ;;  %vm288_vm0 = vcmp.gt.f32.partialorder %v275_v16, %v1787_v3 }
  0xe7   : > { %vm286_vm1 = vcmp.gt.f32.partialorder %v271_v17, %v1790_v4  ;;  %v1849_v21 = vsel %vm288_vm0, 1.0, %v1529_v20 }
  0xe8   : > { %v1852_v22 = vsel %vm286_vm1, 1.0, %v1529_v20 }
  0xe9   : > { %v277_v18 = vpop.permute.xlu1 %276 }
  0xea   : > { %v273_v19 = vpop.permute.xlu0 %272  ;;  %vm289_vm2 = vcmp.gt.f32.partialorder %v277_v18, %v1797_v6 }
  0xeb   : > { %vm287_vm3 = vcmp.gt.f32.partialorder %v273_v19, %v1800_v7  ;;  %v1855_v23 = vsel %vm289_vm2, 1.0, %v1529_v20 }
  0xec   : > { %v1858_v24 = vsel %vm287_vm3, 1.0, %v1529_v20  ;;  %v1243_v25 = vpack.i.bf16 %v1855_v23, %v1849_v21 }
  0xed   : > { %v1238_v26 = vpack.i.bf16 %v1858_v24, %v1852_v22  ;;  %v281_v27 = vpop.permute.xlu1 %280 }
  0xee   : > { %v279_v28 = vpop.permute.xlu0 %278  ;;  %vm291_vm4 = vcmp.gt.f32.partialorder %v281_v27, %v1809_v10  ;;  %1244 = vrot.lane.b32.xlu1 %v1243_v25, %s1530_s2 }
  0xef   : > { %vm290_vm5 = vcmp.gt.f32.partialorder %v279_v28, %v1812_v11  ;;  %1239 = vrot.lane.b32.xlu0 %v1238_v26, %s1530_s2  ;;  %v1867_v29 = vsel %vm291_vm4, 1.0, %v1529_v20  ;;  %v256_v28 = vlaneseq }
  0xf0   : > { %v1870_v30 = vsel %vm290_vm5, 1.0, %v1529_v20 }
  0xf1   : > { %v1248_v31 = vpack.i.bf16 %v1867_v29, %v1870_v30  ;;  %v285_v32 = vpop.permute.xlu1 %284 }
  0xf2   : > { %v283_v33 = vpop.permute.xlu0 %282  ;;  %vm293_vm6 = vcmp.gt.f32.partialorder %v285_v32, %v1821_v14 }
  0xf3   : > { %vm292_vm7 = vcmp.gt.f32.partialorder %v283_v33, %v1824_v15  ;;  %1249 = vrot.lane.b32.xlu0 %v1248_v31, %s1530_s2  ;;  %v1877_v34 = vsel %vm293_vm6, 1.0, %v1529_v20  ;;  %v257_v31 = vand.u32 127, %v256_v28 }
  0xf4   : > { %v1880_v35 = vsel %vm292_vm7, 1.0, %v1529_v20 }
  0xf5   : > { %v1253_v36 = vpack.i.bf16 %v1877_v34, %v1880_v35  ;;  %v372_v37 = vpop.permute.xlu1 %371  ;;  %v1964_v32 = vand.u32 3, %v257_v31 }
  0xf6   : > { %v370_v38 = vpop.permute.xlu0 %369  ;;  %vm386_vm8 = vcmp.gt.f32.partialorder %v372_v37, %v1800_v7 }
  0xf7   : > { %vm385_vm9 = vcmp.gt.f32.partialorder %v370_v38, %v1790_v4  ;;  %1254 = vrot.lane.b32.xlu1 %v1253_v36, %s1530_s2  ;;  %v1887_v39 = vsel %vm386_vm8, 1.0, %v1529_v20  ;;  %v310_v33 = vadd.s32 1, %v1964_v32 }
  0xf8   : > { %v1890_v40 = vsel %vm385_vm9, 1.0, %v1529_v20 }
  0xf9   : > { %v1258_v41 = vpack.i.bf16 %v1887_v39, %v1890_v40  ;;  %v376_v42 = vpop.permute.xlu1 %375  ;;  %vm311_vm8 = vcmp.lt.s32.totalorder %v310_v33, 4 }
  0xfa   : > { %v374_v43 = vpop.permute.xlu0 %373  ;;  %vm388_vm10 = vcmp.gt.f32.partialorder %v376_v42, %v1797_v6  ;;  %v314_v42 = vsel %vm311_vm8, %v1849_v21, 0.0 }
  0xfb   : > { %vm387_vm11 = vcmp.gt.f32.partialorder %v374_v43, %v1787_v3  ;;  %1259 = vrot.lane.b32.xlu0 %v1258_v41, %s1531_s15  ;;  %v1897_v44 = vsel %vm388_vm10, 1.0, %v1529_v20  ;;  %v312_v43 = vsel %vm311_vm8, %v1852_v22, 0.0  ;;  %vm344_vm10 = vcmp.ge.s32.totalorder %v1964_v32, 1 }
  0xfc   : > { %v1900_v45 = vsel %vm387_vm11, 1.0, %v1529_v20  ;;  %vm443_vm11 = vcmp.ge.s32.totalorder %v1964_v32, 2 }
  0xfd   : > { %v1263_v46 = vpack.i.bf16 %v1897_v44, %v1900_v45  ;;  %v380_v47 = vpop.permute.xlu1 %379 }
  0xfe   : > { %v378_v48 = vpop.permute.xlu0 %377  ;;  %vm390_vm12 = vcmp.gt.f32.partialorder %v380_v47, %v1809_v10 }
  0xff   : > { %vm389_vm13 = vcmp.gt.f32.partialorder %v378_v48, %v1812_v11  ;;  %1264 = vrot.lane.b32.xlu1 %v1263_v46, %s1531_s15  ;;  %v1907_v49 = vsel %vm390_vm12, 1.0, %v1529_v20  ;;  %v1976_v46 = vadd.s32 3, %v1964_v32 }
 0x100   : > { %v1910_v50 = vsel %vm389_vm13, 1.0, %v1529_v20  ;;  %vm542_vm13 = vcmp.ge.s32.totalorder %v1964_v32, 3 }
 0x101   : > { %v1268_v51 = vpack.i.bf16 %v1907_v49, %v1910_v50  ;;  %v384_v52 = vpop.permute.xlu1 %383  ;;  %vm509_vm12 = vcmp.lt.s32.totalorder %v1976_v46, 4 }
 0x102   : > { %v382_v53 = vpop.permute.xlu0 %381  ;;  %vm392_vm14 = vcmp.gt.f32.partialorder %v384_v52, %v1821_v14 }
 0x103   : > { %vm391_vm15 = vcmp.gt.f32.partialorder %v382_v53, %v1824_v15  ;;  %1269 = vrot.lane.b32.xlu0 %v1268_v51, %s1531_s15  ;;  %v1917_v54 = vsel %vm392_vm14, 1.0, %v1529_v20  ;;  %v315_v53 = vsel %vm311_vm8, %v1855_v23, 0.0 }
 0x104   : > { %v1920_v55 = vsel %vm391_vm15, 1.0, %v1529_v20 }
 0x105   : > { %v1273_v56 = vpack.i.bf16 %v1917_v54, %v1920_v55  ;;  %v471_v57 = vpop.permute.xlu1 %470 }
 0x106   : > { %v469_v58 = vpop.permute.xlu0 %468  ;;  %vm485_vm0 = vcmp.gt.f32.partialorder %v471_v57, %v1800_v7 }
 0x107   : > { %vm484_vm1 = vcmp.gt.f32.partialorder %v469_v58, %v1790_v4  ;;  %1274 = vrot.lane.b32.xlu1 %v1273_v56, %s1531_s15  ;;  %v1927_v59 = vsel %vm485_vm0, 1.0, %v1529_v20  ;;  %v313_v56 = vsel %vm311_vm8, %v1858_v24, 0.0 }
 0x108   : > { %v1930_v60 = vsel %vm484_vm1, 1.0, %v1529_v20 }
 0x109   : > { %v1278_v61 = vpack.i.bf16 %v1927_v59, %v1930_v60  ;;  %v475_v62 = vpop.permute.xlu1 %474 }
 0x10a   : > { %v473_v63 = vpop.permute.xlu0 %472  ;;  %vm487_vm2 = vcmp.gt.f32.partialorder %v475_v62, %v1797_v6 }
 0x10b   : > { %vm486_vm3 = vcmp.gt.f32.partialorder %v473_v63, %v1787_v3  ;;  %1279 = vrot.lane.b32.xlu0 %v1278_v61, %s1532_s8  ;;  %v1937_v4 = vsel %vm487_vm2, 1.0, %v1529_v20 }
 0x10c   : > { %v1940_v7 = vsel %vm486_vm3, 1.0, %v1529_v20 }
 0x10d   : > { %v1283_v16 = vpack.i.bf16 %v1937_v4, %v1940_v7  ;;  %v479_v17 = vpop.permute.xlu1 %478 }
 0x10e   : > { %v477_v18 = vpop.permute.xlu0 %476  ;;  %vm489_vm4 = vcmp.gt.f32.partialorder %v479_v17, %v1809_v10 }
 0x10f   : > { %vm488_vm5 = vcmp.gt.f32.partialorder %v477_v18, %v1812_v11  ;;  %1284 = vrot.lane.b32.xlu1 %v1283_v16, %s1532_s8  ;;  %v1947_v3 = vsel %vm489_vm4, 1.0, %v1529_v20 }
 0x110   : > { %v1950_v6 = vsel %vm488_vm5, 1.0, %v1529_v20 }
 0x111   : > { %v1288_v19 = vpack.i.bf16 %v1947_v3, %v1950_v6  ;;  %v483_v25 = vpop.permute.xlu1 %482 }
 0x112   : > { %v481_v26 = vpop.permute.xlu0 %480  ;;  %vm491_vm6 = vcmp.gt.f32.partialorder %v483_v25, %v1821_v14  ;;  %v1968_v14 = vadd.s32 2, %v1964_v32 }
 0x113   : > { %vm490_vm7 = vcmp.gt.f32.partialorder %v481_v26, %v1824_v15  ;;  %1289 = vrot.lane.b32.xlu0 %v1288_v19, %s1532_s8  ;;  %v1957_v10 = vsel %vm491_vm6, 1.0, %v1529_v20 }
 0x114   : > { %v1960_v11 = vsel %vm490_vm7, 1.0, %v1529_v20  ;;  %vm410_vm9 = vcmp.lt.s32.totalorder %v1968_v14, 4  ;;  %v510_v14 = vsel %vm509_vm12, %v1930_v60, 0.0  ;;  %v512_v60 = vsel %vm509_vm12, %v1940_v7, 0.0 }
 0x115   : > { %v1293_v27 = vpack.i.bf16 %v1957_v10, %v1960_v11  ;;  %v412_v21 = vsel %vm410_vm9, %v1887_v39, 0.0  ;;  %v411_v22 = vsel %vm410_vm9, %v1890_v40, 0.0  ;;  %v414_v40 = vsel %vm410_vm9, %v1897_v44, 0.0 }
 0x116   : > { %v413_v17 = vsel %vm410_vm9, %v1900_v45, 0.0  ;;  %v316_v44 = vsel %vm311_vm8, %v1870_v30, 0.0  ;;  %v319_v45 = vsel %vm311_vm8, %v1877_v34, 0.0  ;;  %v415_v30 = vsel %vm410_vm9, %v1910_v50, 0.0 }
 0x117   : > { %1294 = vrot.lane.b32.xlu1 %v1293_v27, %s1532_s8  ;;  %v417_v50 = vsel %vm410_vm9, %v1920_v55, 0.0  ;;  %v511_v55 = vsel %vm509_vm12, %v1927_v59, 0.0  ;;  %v513_v59 = vsel %vm509_vm12, %v1937_v4, 0.0  ;;  %v515_v4 = vsel %vm509_vm12, %v1947_v3, 0.0 }
 0x118   : > { %v514_v7 = vsel %vm509_vm12, %v1950_v6, 0.0  ;;  %v517_v6 = vsel %vm509_vm12, %v1957_v10, 0.0 }
 0x160   : > { %v1245_v15 = vpop.permute.xlu1 %1244 }
 0x161   : > { %v1240_v36 = vpop.permute.xlu0 %1239  ;;  %v1247_v20 = vunpack.i.h.bf16 %v1245_v15  ;;  %v1246_v37 = vunpack.i.l.bf16 %v1245_v15 }
 0x162   : > { %v1242_v38 = vunpack.i.h.bf16 %v1240_v36  ;;  %v1241_v41 = vunpack.i.l.bf16 %v1240_v36 }
 0x163   : > { %v348_v47 = vsub.f32 1.0, %v1247_v20  ;;  %v347_v48 = vsub.f32 1.0, %v1246_v37 }
 0x164   : > { %v346_v51 = vsub.f32 1.0, %v1242_v38  ;;  %v345_v52 = vsub.f32 1.0, %v1241_v41  ;;  %v317_v38 = vsel %vm311_vm8, %v1867_v29, 0.0  ;;  %v318_v41 = vsel %vm311_vm8, %v1880_v35, 0.0 }
 0x165   : > { %v1250_v57 = vpop.permute.xlu0 %1249  ;;  %v356_v58 = vsel %vm344_vm10, %v348_v47, 0.0  ;;  %v355_v61 = vsel %vm344_vm10, %v347_v48, 0.0  ;;  %v416_v29 = vsel %vm410_vm9, %v1907_v49, 0.0  ;;  %v418_v49 = vsel %vm410_vm9, %v1917_v54, 0.0 }
 0x166   : > { %v354_v23 = vsel %vm344_vm10, %v346_v51, 0.0  ;;  %v353_v24 = vsel %vm344_vm10, %v345_v52, 0.0  ;;  %v364_v62 = vadd.f32 %v356_v58, %v315_v53  ;;  %v363_v63 = vadd.f32 %v355_v61, %v314_v42 }
 0x167   : > { %v362_v39 = vadd.f32 %v354_v23, %v313_v56  ;;  %v361_v16 = vadd.f32 %v353_v24, %v312_v43  ;;  %v1252_v18 = vunpack.i.h.bf16 %v1250_v57  ;;  %v1251_v19 = vunpack.i.l.bf16 %v1250_v57 }
 0x168   : > { %v422_v28 = vadd.f32 %v414_v40, %v364_v62  ;;  %v421_v31 = vadd.f32 %v413_v17, %v363_v63 }
 0x169   : > { %v1255_v25 = vpop.permute.xlu1 %1254  ;;  %v419_v26 = vadd.f32 %v411_v22, %v361_v16  ;;  %v420_v27 = vadd.f32 %v412_v21, %v362_v39  ;;  %v350_v15 = vsub.f32 1.0, %v1252_v18  ;;  %v349_v36 = vsub.f32 1.0, %v1251_v19 }
 0x16a   : > { %v1257_v20 = vunpack.i.h.bf16 %v1255_v25  ;;  %v1256_v37 = vunpack.i.l.bf16 %v1255_v25 }
 0x16b   : > { %v358_v42 = vsel %vm344_vm10, %v350_v15, 0.0  ;;  %v357_v43 = vsel %vm344_vm10, %v349_v36, 0.0 }
 0x16c   : > { %v352_v47 = vsub.f32 1.0, %v1257_v20  ;;  %v351_v48 = vsub.f32 1.0, %v1256_v37  ;;  %v366_v34 = vadd.f32 %v358_v42, %v317_v38  ;;  %v365_v51 = vadd.f32 %v357_v43, %v316_v44 }
 0x16d   : > { %v1260_v33 = vpop.permute.xlu0 %1259 }
 0x16e   : > { %v360_v35 = vsel %vm344_vm10, %v352_v47, 0.0  ;;  %v359_v52 = vsel %vm344_vm10, %v351_v48, 0.0  ;;  %v1262_v53 = vunpack.i.h.bf16 %v1260_v33  ;;  %v1261_v56 = vunpack.i.l.bf16 %v1260_v33 }
 0x16f   : > { %v368_v21 = vadd.f32 %v360_v35, %v319_v45  ;;  %v367_v22 = vadd.f32 %v359_v52, %v318_v41  ;;  %v423_v57 = vadd.f32 %v415_v30, %v365_v51  ;;  %v424_v58 = vadd.f32 %v416_v29, %v366_v34 }
 0x170   : > { %v445_v61 = vsub.f32 1.0, %v1262_v53  ;;  %v444_v23 = vsub.f32 1.0, %v1261_v56 }
 0x171   : > { %v1265_v24 = vpop.permute.xlu1 %1264  ;;  %v426_v62 = vadd.f32 %v418_v49, %v368_v21  ;;  %v425_v63 = vadd.f32 %v417_v50, %v367_v22  ;;  %v516_v50 = vsel %vm509_vm12, %v1960_v11, 0.0 }
 0x172   : > { %v453_v39 = vsel %vm443_vm11, %v445_v61, 0.0  ;;  %v452_v16 = vsel %vm443_vm11, %v444_v23, 0.0  ;;  %v1267_v40 = vunpack.i.h.bf16 %v1265_v24  ;;  %v1266_v17 = vunpack.i.l.bf16 %v1265_v24 }
 0x173   : > { %v460_v54 = vadd.f32 %v452_v16, %v419_v26  ;;  %v461_v18 = vadd.f32 %v453_v39, %v420_v27 }
 0x174   : > { %v447_v19 = vsub.f32 1.0, %v1267_v40  ;;  %v446_v25 = vsub.f32 1.0, %v1266_v17 }
 0x175   : > { %v1270_v15 = vpop.permute.xlu0 %1269  ;;  %v518_v36 = vadd.f32 %v510_v14, %v460_v54  ;;  %v519_v20 = vadd.f32 %v511_v55, %v461_v18 }
 0x176   : > { %v455_v37 = vsel %vm443_vm11, %v447_v19, 0.0  ;;  %v454_v26 = vsel %vm443_vm11, %v446_v25, 0.0  ;;  %v1272_v27 = vunpack.i.h.bf16 %v1270_v15  ;;  %v1271_v38 = vunpack.i.l.bf16 %v1270_v15 }
 0x177   : > { %v463_v44 = vadd.f32 %v455_v37, %v422_v28  ;;  %v462_v45 = vadd.f32 %v454_v26, %v421_v31 }
 0x178   : > { %v449_v41 = vsub.f32 1.0, %v1272_v27  ;;  %v448_v42 = vsub.f32 1.0, %v1271_v38 }
 0x179   : > { %v1275_v43 = vpop.permute.xlu1 %1274  ;;  %v521_v47 = vadd.f32 %v513_v59, %v463_v44  ;;  %v520_v48 = vadd.f32 %v512_v60, %v462_v45 }
 0x17a   : > { %v457_v29 = vsel %vm443_vm11, %v449_v41, 0.0  ;;  %v456_v28 = vsel %vm443_vm11, %v448_v42, 0.0  ;;  %v1277_v31 = vunpack.i.h.bf16 %v1275_v43  ;;  %v1276_v30 = vunpack.i.l.bf16 %v1275_v43 }
 0x17b   : > { %v464_v34 = vadd.f32 %v456_v28, %v423_v57  ;;  %v465_v51 = vadd.f32 %v457_v29, %v424_v58 }
 0x17c   : > { %v451_v33 = vsub.f32 1.0, %v1277_v31  ;;  %v450_v35 = vsub.f32 1.0, %v1276_v30 }
 0x17d   : > { %v1280_v52 = vpop.permute.xlu0 %1279  ;;  %v522_v53 = vadd.f32 %v514_v7, %v464_v34  ;;  %v523_v56 = vadd.f32 %v515_v4, %v465_v51 }
 0x17e   : > { %v459_v21 = vsel %vm443_vm11, %v451_v33, 0.0  ;;  %v458_v22 = vsel %vm443_vm11, %v450_v35, 0.0  ;;  %v1282_v57 = vunpack.i.h.bf16 %v1280_v52  ;;  %v1281_v58 = vunpack.i.l.bf16 %v1280_v52 }
 0x17f   : > { %v467_v49 = vadd.f32 %v459_v21, %v426_v62  ;;  %v466_v3 = vadd.f32 %v458_v22, %v425_v63 }
 0x180   : > { %v544_v61 = vsub.f32 1.0, %v1282_v57  ;;  %v543_v23 = vsub.f32 1.0, %v1281_v58 }
 0x181   : > { %v1285_v24 = vpop.permute.xlu1 %1284  ;;  %v525_v39 = vadd.f32 %v517_v6, %v467_v49  ;;  %v524_v16 = vadd.f32 %v516_v50, %v466_v3 }
 0x182   : > { %v552_v62 = vsel %vm542_vm13, %v544_v61, 0.0  ;;  %v551_v63 = vsel %vm542_vm13, %v543_v23, 0.0  ;;  %v1287_v40 = vunpack.i.h.bf16 %v1285_v24  ;;  %v1286_v17 = vunpack.i.l.bf16 %v1285_v24 }
 0x183   : > { %v559_v54 = vadd.f32 %v551_v63, %v518_v36  ;;  %v560_v10 = vadd.f32 %v552_v62, %v519_v20 }
 0x184   : > { %v546_v18 = vsub.f32 1.0, %v1287_v40  ;;  %v545_v55 = vsub.f32 1.0, %v1286_v17 }
 0x185   : > { %vm567_vm14 = vcmp.lt.f32.partialorder %v559_v54, 2.0  ;;  %vm568_vm15 = vcmp.lt.f32.partialorder %v560_v10, 2.0  ;;  %v1290_v11 = vpop.permute.xlu0 %1289 }
 0x186   : > { %v575_v46 = vsel %vm567_vm14, %v1782_v1, 0.0  ;;  %v576_v14 = vsel %vm568_vm15, %v1792_v5, 0.0  ;;  %v554_v19 = vsel %vm542_vm13, %v546_v18, 0.0  ;;  %v553_v25 = vsel %vm542_vm13, %v545_v55, 0.0 }
 0x187   : > { %585 = vst [vmem:[%s2085_s4] sm:$0xff] %v575_v46  ;;  %586 = vst [vmem:[%s2085_s4 + $0x8] sm:$0xff] %v576_v14  ;;  %v562_v15 = vadd.f32 %v554_v19, %v521_v47  ;;  %v561_v36 = vadd.f32 %v553_v25, %v520_v48  ;;  %v1292_v20 = vunpack.i.h.bf16 %v1290_v11  ;;  %v1291_v1 = vunpack.i.l.bf16 %v1290_v11 }
 0x189   : > { %vm570_vm0 = vcmp.lt.f32.partialorder %v562_v15, 2.0  ;;  %vm569_vm1 = vcmp.lt.f32.partialorder %v561_v36, 2.0  ;;  %v548_v5 = vsub.f32 1.0, %v1292_v20  ;;  %v547_v37 = vsub.f32 1.0, %v1291_v1  ;;  %v1295_v26 = vpop.permute.xlu1 %1294 }
 0x18a   : > { %v578_v27 = vsel %vm570_vm0, %v1784_v2, 0.0  ;;  %v577_v38 = vsel %vm569_vm1, %v1780_v0, 0.0  ;;  %v1297_v44 = vunpack.i.h.bf16 %v1295_v26  ;;  %v1296_v45 = vunpack.i.l.bf16 %v1295_v26 }
 0x18b   : > { %588 = vst [vmem:[%s2085_s4 + $0x18] sm:$0xff] %v578_v27  ;;  %587 = vst [vmem:[%s2085_s4 + $0x10] sm:$0xff] %v577_v38  ;;  %v556_v59 = vsel %vm542_vm13, %v548_v5, 0.0  ;;  %v555_v60 = vsel %vm542_vm13, %v547_v37, 0.0 }
 0x18c   : > { %v563_v41 = vadd.f32 %v555_v60, %v522_v53  ;;  %v564_v42 = vadd.f32 %v556_v59, %v523_v56  ;;  %v550_v43 = vsub.f32 1.0, %v1297_v44  ;;  %v549_v47 = vsub.f32 1.0, %v1296_v45 }
 0x18e   : > { %vm571_vm2 = vcmp.lt.f32.partialorder %v563_v41, 2.0  ;;  %vm572_vm3 = vcmp.lt.f32.partialorder %v564_v42, 2.0  ;;  %v558_v0 = vsel %vm542_vm13, %v550_v43, 0.0  ;;  %v557_v2 = vsel %vm542_vm13, %v549_v47, 0.0 }
 0x18f   : > { %v579_v48 = vsel %vm571_vm2, %v1804_v9, 0.0  ;;  %v580_v29 = vsel %vm572_vm3, %v1802_v8, 0.0  ;;  %v566_v28 = vadd.f32 %v558_v0, %v525_v39  ;;  %v565_v31 = vadd.f32 %v557_v2, %v524_v16 }
 0x190   : > { %589 = vst [vmem:[%s2085_s4 + $0x20] sm:$0xff] %v579_v48  ;;  %590 = vst [vmem:[%s2085_s4 + $0x28] sm:$0xff] %v580_v29 }
 0x191   : > { %vm574_vm4 = vcmp.lt.f32.partialorder %v566_v28, 2.0  ;;  %vm573_vm5 = vcmp.lt.f32.partialorder %v565_v31, 2.0 }
 0x192   : > { %v582_v30 = vsel %vm574_vm4, %v1814_v12, 0.0  ;;  %v581_v34 = vsel %vm573_vm5, %v1816_v13, 0.0 }
 0x193   : > { %592 = vst [vmem:[%s2085_s4 + $0x38] sm:$0xff] %v582_v30  ;;  %591 = vst [vmem:[%s2085_s4 + $0x30] sm:$0xff] %v581_v34 }
 0x194 PF: > { %v618_v9 = vld [vmem:[%s1767_s12 + $0x78] sm:$0xff]  ;;  %v617_v8 = vld [vmem:[%s1767_s12 + $0x70] sm:$0xff]  ;;  %v616_v32 = vld [vmem:[%s1767_s12 + $0x68] sm:$0xff]  ;;  %s2276_s28 = sld [smem:[#allocation15_spill]] }
 0x195   : > { %1000 = vmatprep.subr.mxu0 %v618_v9  ;;  %1044 = vmatprep.subr.mxu1 %v618_v9  ;;  %v615_v12 = vld [vmem:[%s1767_s12 + $0x60] sm:$0xff]  ;;  %v614_v13 = vld [vmem:[%s1767_s12 + $0x58] sm:$0xff]  ;;  %v613_v51 = vld [vmem:[%s1767_s12 + $0x50] sm:$0xff] }
 0x196   : > { %1001 = vmatpush3.msra.mxu0 %v618_v9  ;;  %1060 = vmatpush3.msra.mxu1 %v618_v9  ;;  %v612_v4 = vld [vmem:[%s1767_s12 + $0x48] sm:$0xff]  ;;  %v611_v7 = vld [vmem:[%s1767_s12 + $0x40] sm:$0xff]  ;;  %v610_v33 = vld [vmem:[%s1767_s12 + $0x38] sm:$0xff] }
 0x197   : > { %1002 = vmatprep.subr.mxu0 %v617_v8  ;;  %1045 = vmatprep.subr.mxu1 %v617_v8  ;;  %v609_v35 = vld [vmem:[%s1767_s12 + $0x30] sm:$0xff]  ;;  %v608_v52 = vld [vmem:[%s1767_s12 + $0x28] sm:$0xff]  ;;  %v607_v53 = vld [vmem:[%s1767_s12 + $0x20] sm:$0xff] }
 0x198   : > { %1003 = vmatpush3.msra.mxu0 %v617_v8  ;;  %1061 = vmatpush3.msra.mxu1 %v617_v8  ;;  %v606_v56 = vld [vmem:[%s1767_s12 + $0x18] sm:$0xff]  ;;  %v605_v21 = vld [vmem:[%s1767_s12 + $0x10] sm:$0xff]  ;;  %v604_v22 = vld [vmem:[%s1767_s12 + $0x8] sm:$0xff] }
 0x199   : > { %1004 = vmatprep.subr.mxu0 %v616_v32  ;;  %1046 = vmatprep.subr.mxu1 %v616_v32  ;;  %v603_v57 = vld [vmem:[%s1767_s12] sm:$0xff] }
 0x19a   : > { %1005 = vmatpush3.msra.mxu0 %v616_v32  ;;  %1062 = vmatpush3.msra.mxu1 %v616_v32  ;;  %s963_s3 = sshll.u32 %s2276_s28, 6  ;;  %p964_p2 = scmp.ne.s32.totalorder %s2276_s28, 0 }
 0x19b   : > { %1006 = vmatprep.subr.mxu0 %v615_v12  ;;  %1047 = vmatprep.subr.mxu1 %v615_v12  ;;  %s594_s19 = scalar_lea.vmem [#allocation2], %s963_s3 }
 0x19c   : > { %1007 = vmatpush3.msra.mxu0 %v615_v12  ;;  %1063 = vmatpush3.msra.mxu1 %v615_v12  ;;  %v595_v58 = vld [vmem:[%s594_s19] sm:$0xff]  ;;  %v596_v3 = vld [vmem:[%s594_s19 + $0x8] sm:$0xff]  ;;  %v597_v50 = vld [vmem:[%s594_s19 + $0x10] sm:$0xff] }
 0x19d   : > { %1008 = vmatprep.subr.mxu0 %v614_v13  ;;  %1048 = vmatprep.subr.mxu1 %v614_v13  ;;  %v599_v49 = vld [vmem:[%s594_s19 + $0x20] sm:$0xff]  ;;  %v600_v6 = vld [vmem:[%s594_s19 + $0x28] sm:$0xff]  ;;  %v601_v61 = vld [vmem:[%s594_s19 + $0x30] sm:$0xff] }
 0x19e   : > { %1009 = vmatpush3.msra.mxu0 %v614_v13  ;;  %1064 = vmatpush3.msra.mxu1 %v614_v13  ;;  %v598_v23 = vld [vmem:[%s594_s19 + $0x18] sm:$0xff] }
 0x19f   : > { %1010 = vmatprep.subr.mxu0 %v613_v51  ;;  %1049 = vmatprep.subr.mxu1 %v613_v51  ;;  %v602_v24 = vld [vmem:[%s594_s19 + $0x38] sm:$0xff] }
 0x1a0   : > { %1011 = vmatpush3.msra.mxu0 %v613_v51  ;;  %1065 = vmatpush3.msra.mxu1 %v613_v51 }
 0x1a1   : > { %1012 = vmatprep.subr.mxu0 %v612_v4  ;;  %1050 = vmatprep.subr.mxu1 %v612_v4 }
 0x1a2   : > { %1013 = vmatpush3.msra.mxu0 %v612_v4  ;;  %1066 = vmatpush3.msra.mxu1 %v612_v4 }
 0x1a3   : > { %1014 = vmatprep.subr.mxu0 %v611_v7  ;;  %1051 = vmatprep.subr.mxu1 %v611_v7 }
 0x1a4   : > { %1015 = vmatpush3.msra.mxu0 %v611_v7  ;;  %1067 = vmatpush3.msra.mxu1 %v611_v7 }
 0x1a5   : > { %1016 = vmatprep.subr.mxu0 %v610_v33  ;;  %1052 = vmatprep.subr.mxu1 %v610_v33 }
 0x1a6   : > { %1017 = vmatpush3.msra.mxu0 %v610_v33  ;;  %1068 = vmatpush3.msra.mxu1 %v610_v33 }
 0x1a7   : > { %1018 = vmatprep.subr.mxu0 %v609_v35  ;;  %1053 = vmatprep.subr.mxu1 %v609_v35 }
 0x1a8   : > { %1019 = vmatpush3.msra.mxu0 %v609_v35  ;;  %1069 = vmatpush3.msra.mxu1 %v609_v35 }
 0x1a9   : > { %1020 = vmatprep.subr.mxu0 %v608_v52  ;;  %1054 = vmatprep.subr.mxu1 %v608_v52 }
 0x1aa   : > { %1021 = vmatpush3.msra.mxu0 %v608_v52  ;;  %1070 = vmatpush3.msra.mxu1 %v608_v52 }
 0x1ab   : > { %1022 = vmatprep.subr.mxu0 %v607_v53  ;;  %1055 = vmatprep.subr.mxu1 %v607_v53 }
 0x1ac   : > { %1023 = vmatpush3.msra.mxu0 %v607_v53  ;;  %1071 = vmatpush3.msra.mxu1 %v607_v53 }
 0x1ad   : > { %1024 = vmatprep.subr.mxu0 %v606_v56  ;;  %1056 = vmatprep.subr.mxu1 %v606_v56 }
 0x1ae   : > { %1025 = vmatpush3.msra.mxu0 %v606_v56  ;;  %1072 = vmatpush3.msra.mxu1 %v606_v56 }
 0x1af   : > { %1026 = vmatprep.subr.mxu0 %v605_v21  ;;  %1057 = vmatprep.subr.mxu1 %v605_v21 }
 0x1b0   : > { %1027 = vmatpush3.msra.mxu0 %v605_v21  ;;  %1073 = vmatpush3.msra.mxu1 %v605_v21 }
 0x1b1   : > { %1028 = vmatprep.subr.mxu0 %v604_v22  ;;  %1058 = vmatprep.subr.mxu1 %v604_v22 }
 0x1b2   : > { %1029 = vmatpush3.msra.mxu0 %v604_v22  ;;  %1074 = vmatpush3.msra.mxu1 %v604_v22 }
 0x1b3   : > { %1030 = vmatprep.subr.mxu0 %v603_v57  ;;  %1059 = vmatprep.subr.mxu1 %v603_v57 }
 0x1b4   : > { %1031 = vmatpush3.msra.mxu0 %v603_v57  ;;  %1075 = vmatpush3.msra.mxu1 %v603_v57 }
 0x1b5   : > { %1032 = vmatprep.mubr.f32.mxu0 %v595_v58  ;;  %1038 = vmatprep.mubr.f32.mxu1 %v599_v49 }
 0x1b6   : > { %1033 = vmatmul.mubr.f32.vlgmr.msra.gmra.mxu0 %v596_v3  ;;  %1039 = vmatmul.mubr.f32.vlgmr.msra.gmra.mxu1 %v600_v6 }
 0x1b7   : > { %1035 = vmatprep.mubr.f32.mxu0 %v597_v50  ;;  %1041 = vmatprep.mubr.f32.mxu1 %v601_v61 }
 0x1ba   : > { %1036 = vmatmul.mubr.f32.gmra.mxu0 %v598_v23  ;;  %1042 = vmatmul.mubr.f32.gmra.mxu1 %v602_v24 }
 0x276   : > { %v1034_v39 = vpop.f32.mrf.mxu0  ;;  %v1040_v16 = vpop.f32.mrf.mxu1 }
 0x278   : > { %v685_v62 = vpop.f32.mrf.mxu0  ;;  %v705_v63 = vpop.f32.mrf.mxu1  ;;  %727 = sbr.rel (%p964_p2) target bundleno = 642 (0x282), region = 44 }
 0x27a   : > { %v1037_v40 = vpop.f32.mrf.mxu0  ;;  %v1043_v17 = vpop.f32.mrf.mxu1 }
 0x27c   : > { %v695_v54 = vpop.f32.mrf.mxu0  ;;  %v715_v10 = vpop.f32.mrf.mxu1 }
 0x27d   : > { %v1533_v18 = vmov 0.0  }
 0x27e   : > { %728 = vst [vmem:[#allocation3 + $0x30] sm:$0xff] %v1533_v18  ;;  %729 = vst [vmem:[#allocation3] sm:$0xff] %v1533_v18 }
 0x27f   : > { %730 = vst [vmem:[#allocation3 + $0x18] sm:$0xff] %v1533_v18  ;;  %731 = vst [vmem:[#allocation3 + $0x10] sm:$0xff] %v1533_v18 }
 0x280   : > { %732 = vst [vmem:[#allocation3 + $0x8] sm:$0xff] %v1533_v18  ;;  %733 = vst [vmem:[#allocation3 + $0x20] sm:$0xff] %v1533_v18 }
 0x281   : > { %734 = vst [vmem:[#allocation3 + $0x28] sm:$0xff] %v1533_v18  ;;  %735 = vst [vmem:[#allocation3 + $0x38] sm:$0xff] %v1533_v18 }
 0x282 PF: > { %s2277_s12 = sld [smem:[#allocation15_spill]] }
 0x285   : > { %v736_v55 = vld [vmem:[#allocation3 + $0x30] sm:$0xff]  ;;  %v737_v11 = vld [vmem:[#allocation3] sm:$0xff] }
 0x286   : > { %v738_v46 = vld [vmem:[#allocation3 + $0x18] sm:$0xff]  ;;  %v744_v14 = vadd.f32 %v736_v55, %v685_v62  ;;  %v745_v19 = vadd.f32 %v1034_v39, %v737_v11  ;;  %v739_v15 = vld [vmem:[#allocation3 + $0x10] sm:$0xff] }
 0x287   : > { %v746_v25 = vadd.f32 %v738_v46, %v695_v54  ;;  %v740_v36 = vld [vmem:[#allocation3 + $0x8] sm:$0xff]  ;;  %v741_v20 = vld [vmem:[#allocation3 + $0x20] sm:$0xff]  ;;  %v747_v1 = vadd.f32 %v1037_v40, %v739_v15 }
 0x288   : > { %v748_v5 = vadd.f32 %v740_v36, %v705_v63  ;;  %v749_v37 = vadd.f32 %v1040_v16, %v741_v20  ;;  %v742_v26 = vld [vmem:[#allocation3 + $0x28] sm:$0xff]  ;;  %v743_v27 = vld [vmem:[#allocation3 + $0x38] sm:$0xff]  ;;  %752 = vst [vmem:[#allocation3 + $0x30] sm:$0xff] %v744_v14  ;;  %753 = vst [vmem:[#allocation3] sm:$0xff] %v745_v19  ;;  %p965_p1 = scmp.ne.s32.totalorder %s2277_s12, 1 }
 0x289   : > { %754 = vst [vmem:[#allocation3 + $0x18] sm:$0xff] %v746_v25  ;;  %v750_v38 = vadd.f32 %v742_v26, %v715_v10  ;;  %v751_v44 = vadd.f32 %v1043_v17, %v743_v27  ;;  %755 = vst [vmem:[#allocation3 + $0x10] sm:$0xff] %v747_v1 }
 0x28a   : > { %756 = vst [vmem:[#allocation3 + $0x8] sm:$0xff] %v748_v5  ;;  %757 = vst [vmem:[#allocation3 + $0x20] sm:$0xff] %v749_v37  ;;  %763 = sbr.rel (%p965_p1) target bundleno = 660 (0x294), region = 48 }
 0x28b   : > { %758 = vst [vmem:[#allocation3 + $0x28] sm:$0xff] %v750_v38  ;;  %759 = vst [vmem:[#allocation3 + $0x38] sm:$0xff] %v751_v44 }
 0x28f   : > { %v764_v45 = vld [vmem:[#allocation3 + $0x30] sm:$0xff]  ;;  %v765_v59 = vld [vmem:[#allocation3] sm:$0xff] }
 0x290   : > { %v766_v60 = vld [vmem:[#allocation3 + $0x18] sm:$0xff]  ;;  %772 = vst [vmem:[%s1776_s18] sm:$0xff] %v764_v45  ;;  %773 = vst [vmem:[%s1776_s18 + $0x8] sm:$0xff] %v765_v59  ;;  %v767_v41 = vld [vmem:[#allocation3 + $0x10] sm:$0xff] }
 0x291   : > { %774 = vst [vmem:[%s1776_s18 + $0x10] sm:$0xff] %v766_v60  ;;  %v768_v42 = vld [vmem:[#allocation3 + $0x8] sm:$0xff]  ;;  %v769_v43 = vld [vmem:[#allocation3 + $0x20] sm:$0xff]  ;;  %775 = vst [vmem:[%s1776_s18 + $0x18] sm:$0xff] %v767_v41 }
 0x292   : > { %776 = vst [vmem:[%s1776_s18 + $0x20] sm:$0xff] %v768_v42  ;;  %777 = vst [vmem:[%s1776_s18 + $0x28] sm:$0xff] %v769_v43  ;;  %v770_v47 = vld [vmem:[#allocation3 + $0x28] sm:$0xff]  ;;  %v771_v0 = vld [vmem:[#allocation3 + $0x38] sm:$0xff] }
 0x293   : > { %778 = vst [vmem:[%s1776_s18 + $0x30] sm:$0xff] %v770_v47  ;;  %779 = vst [vmem:[%s1776_s18 + $0x38] sm:$0xff] %v771_v0 }
 0x294 PF: > { %s2278_s27 = sld [smem:[#allocation17_spill]]  ;;  %s796_s9 = sshll.u32 %s1776_s18, 4  ;;  %s2139_s9 = int_to_ptr.vmem [resolvable:$true] %s796_s9 }
 0x295   : > { %s2279_s26 = sld [smem:[#allocation16_spill]]  ;;  %s2148_s28 = scalar_lea.sflag [#allocation6], %s225_s6 }
 0x296   : > { %s2282_s0 = sld [smem:[#allocation24_spill]]  ;;  %s1354_s3 = scalar_lea.vmem %s2139_s9, 1024 }
 0x297   : > { %p1355_p3 = scmp.ne.s32.totalorder %s2139_s9, %s1354_s3  ;;  %s1534_s18 = smov [#allocation9]  }
 0x298   : > { %s1358_s19 = sshll.u32 %s1534_s18, 4  ;;  %s1359_s19 = int_to_ptr.vmem [resolvable:$false] %s1358_s19 }
 0x299   : > { %p1356_p9 = pnand %p1355_p3, %p1659_p10  ;;  %s1360_s12 = scalar_lea.vmem %s1359_s19, 2048 }
 0x29a   : > { %s975_s7 = sshll.u32 %s2278_s27, 4  ;;  %p1361_p0 = scmp.lt.s32.totalorder %s2139_s9, %s1359_s19 }
 0x29b   : > { %s793_s29 = sadd.s32 %s2279_s26, %s975_s7  ;;  %p1357_p4 = pneg %p1356_p9 }
 0x29c   : > { %s969_s2 = sshll.u32 %s793_s29, 7  ;;  %p1362_p5 = scmp.lt.s32.totalorder %s1360_s12, %s1354_s3 }
 0x29d   : > { %s2144_s4 = scalar_lea.hbm %s2282_s0, %s969_s2 }
 0x29e   : > { %p1363_p12 = por %p1362_p5, %p1361_p0 }
 0x2a0   : > { %p1364_p8 = pnand %p1363_p12, %p1357_p4 }
 0x2a2   : > { %1367 = shalt.err (!%p1364_p8)
}
 0x2a3   : > { %s1368_s6 = scalar_lea.hbm %s2144_s4, 1024  ;;  %s1372_s10 = scalar_lea.hbm %s2282_s0, 4096 }
 0x2a4   : > { %p1369_p7 = scmp.ne.s32.totalorder %s2144_s4, %s1368_s6  ;;  %p1373_p2 = scmp.lt.s32.totalorder %s2144_s4, %s2282_s0 }
 0x2a5   : > { %p1374_p1 = scmp.lt.s32.totalorder %s1372_s10, %s1368_s6 }
 0x2a6   : > { %p1370_p13 = pnand %p1369_p7, %p1659_p10 }
 0x2a7   : > { %p1375_p3 = por %p1374_p1, %p1373_p2 }
 0x2a8   : > { %p1371_p6 = pneg %p1370_p13 }
 0x2aa   : > { %p1376_p9 = pnand %p1375_p3, %p1371_p6 }
 0x2ac   : > { %1379 = shalt.err (!%p1376_p9)
}
 0x2ad   : > { %s1535_s2 = smov 128   ;;  %s1536_s15 = smov 256  }
 0x2ae   : > { %s1537_s8 = smov 8  }
 0x2af   : > { %1080 = dma.vmem_to_hbm [thread:$0]  (%p1659_p10), %s2139_s9, 1024, %s2144_s4, %s2148_s28, %s1535_s2, %s1536_s15, %s1537_s8  }
 0x2b0 PF: > { %s2283_s3 = sld [smem:[#allocation13_spill]]  ;;  %p1094_p4 = scmp.ge.s32.totalorder %s1518_s24, 2 }
 0x2b2   : > { %p1090_p0 = pnand %p1094_p4, %p1663_p11 }
 0x2b4   : > { %p1091_p5 = pneg %p1090_p0 }
 0x2b6   : > { %s811_s19 = sand.u32 1, %s2283_s3  }
 0x2b7   : > { %s812_s12 = scalar_lea.sflag [#allocation6], %s811_s19 }
 0x2b8   : > { %1453 = dma.done.wait (%p1091_p5), %s812_s12, 1024  }
 0x2b9   : > { %1455 = vsyncadd (%p1091_p5), %s812_s12, 4294966272  ;;  %s21_s24 = sadd.s32 1, %s1518_s24   ;;  %s2286_s9 = sld [smem:[#allocation14_spill]] }
 0x2ba   : > { %p2176_p12 = scmp.ge.s32.totalorder %s21_s24, 10   ;;  %s2287_s25 = sld [smem:[#allocation20_spill]] }
 0x2bb   : > { %s2288_s4 = sld [smem:[#allocation21_spill]]  ;;  %s2290_s10 = smov %s1466_s11 }
 0x2bc   : > { %s2289_s28 = sld [smem:[#allocation22_spill]]  ;;  %s2291_s11 = smov %s1739_s20 }
 0x2bd   : > { %s2292_s12 = smov %s1474_s13  ;;  %s2293_s13 = smov %s1478_s14 }
 0x2be   : > { %s2294_s14 = smov %s1729_s30  ;;  %s2295_s15 = smov %s1486_s16 }
 0x2bf   : > { %s2296_s16 = smov %s1490_s17  ;;  %s2297_s17 = smov %s1736_s5 }
 0x2c0   : > { %s2298_s18 = smov %s1506_s21  ;;  %s2299_s19 = smov %s1510_s22 }
 0x2c1   : > { %s2300_s20 = smov %s1514_s23  ;;  %s2301_s21 = smov %s2287_s25 }
 0x2c2   : > { %s2302_s22 = smov %s2288_s4  ;;  %s2303_s23 = smov %s2289_s28 }
 0x2c3   :  { %20 = sbr.rel (!%p2176_p12) target bundleno = 16 (0x10), region = 101 }
 0x2c8   :  { %817 = vsyncpa [#allocation5], 1 }
 0x2c9   :  { %819 = vsyncpa [#allocation5 + $0x1], 1 }
 0x2ca   :  { %820 = vsyncpa [#allocation8], 1 }
 0x2cb   :  { %822 = vsyncpa [#allocation8 + $0x1], 1 }
 0x2cc   :  { %823 = vsyncpa [#allocation6], 1 }
 0x2cd   :  { %825 = vsyncpa [#allocation6 + $0x1], 1 }

</bundles_post_ra>
